<compile_context>
chip_gen: v7x
topology: tpu7x:2x2x1
jax: 0.10.0
libtpu: 0.0.40
codegen_flags: <defaults>
</compile_context>

<pallas_src>
import jax
import jax.numpy as jnp
from jax.experimental import pallas as pl
from jax.experimental.pallas import tpu as pltpu


def _linear_kernel(xt_ref, w_ref, b_ref, o_ref):
    """One lane-dense row tile of  out = x @ W^T + b.

    xt_ref: (IN, TB) VMEM  -- x transposed: features on sublanes, rows on lanes
    w_ref : (IN, 1)  VMEM  -- weight column, resident (constant block index)
    b_ref : (1,)     SMEM  -- scalar bias (single sld, no padded VMEM tile)
    o_ref : (1, TB)  VMEM  -- lane-dense output row (unmasked vst's)
    """
    xt = xt_ref[...]                      # (IN, TB)
    w = w_ref[...]                        # (IN, 1) -> broadcast along lanes (VPU)
    b = b_ref[0]                          # scalar bias from SMEM
    # VPU multiply + short sublane (IN=12) reduce -> one lane-dense (1, TB) row.
    out = jnp.sum(xt * w, axis=0, keepdims=True) + b
    o_ref[...] = out.astype(o_ref.dtype)


def _choose_row_tile(batch):
    """Row tile: multiple of 128 (lane-dense output), large enough to amortize
    the ~0.35 us per-grid-step overhead, but leaving >= 2 grid steps when the
    batch allows so the "parallel" axis can shard across both TCs on v7x."""
    b128 = ((batch + 127) // 128) * 128
    tb = max(128, b128 // 2)              # aim for at least 2 grid steps
    tb = min(8192, tb)                    # 16(sub-pad)*8192*4B*2buf ~= 1 MiB VMEM
    return ((tb + 127) // 128) * 128


def _linear_forward_pallas(x, weight, bias):
    B, IN = x.shape
    OUT = weight.shape[0]
    TB = _choose_row_tile(B)
    num_tiles = pl.cdiv(B, TB)

    # One-time layout plumbing in XLA (not per grid step).  No jnp.pad: the
    # ragged final tile is a Pallas partial block (bounded DMA in, masked
    # writes out), so x is read exactly once from HBM by the kernel.
    xt = x.T.astype(jnp.float32)                 # (IN, B)
    w_col = weight.T.astype(jnp.float32)         # (IN, 1)
    b_vec = bias.reshape(1).astype(jnp.float32)  # (1,)

    out_row = pl.pallas_call(
        _linear_kernel,
        out_shape=jax.ShapeDtypeStruct((1, B), jnp.float32),
        grid=(num_tiles,),
        in_specs=[
            # Streamed lane-dense x^T tile: rows of the batch on the lane axis.
            pl.BlockSpec((IN, TB), lambda i: (0, i)),
            # Weight column: same (only) block every step -> stays resident.
            pl.BlockSpec((IN, 1), lambda i: (0, 0)),
            # Bias scalar in SMEM.
            pl.BlockSpec(memory_space=pltpu.MemorySpace.SMEM),
        ],
        # Lane-dense (1, TB) output row per tile (reshaped to (B, 1) below).
        out_specs=pl.BlockSpec((1, TB), lambda i: (0, i)),
        compiler_params=pltpu.CompilerParams(
            # Row tiles are independent -> shard across TensorCores on v7x.
            dimension_semantics=("parallel",),
        ),
        cost_estimate=pl.CostEstimate(
            flops=2 * B * IN * OUT,
            bytes_accessed=4 * (B * IN + IN * OUT + OUT + B * OUT),
            transcendentals=0,
        ),
    )(xt, w_col, b_vec)

    # (1, B) -> (B, 1): same element order, tiny (4*B bytes) wrapper reshape.
    return out_row.reshape(B, OUT)


# Below this batch the pallas_call dispatch + one grid step is pure fixed
# overhead (<1 KiB of HBM traffic) and the custom-call boundary blocks XLA
# fusion with surrounding ops -> use the trivial XLA matmul instead.
_PALLAS_MIN_BATCH = 1024


def linear_forward(x, weight, bias, *, min_pallas_batch=_PALLAS_MIN_BATCH):
    """Forward pass of nn.Linear(IN, 1): out = x @ weight.T + bias, shape (B, 1)."""
    B, IN = x.shape
    OUT, IN_w = weight.shape
    assert IN == IN_w and OUT == 1, "module spec has output_size == 1"
    # TODO(synk): OUT > 1 would use an (IN, OUT) resident weight tile + jnp.dot.
    if B < min_pallas_batch:
        return x @ weight.T + bias[None, :]
    return _linear_forward_pallas(x, weight, bias)


if __name__ == "__main__":
    # Shapes implied by the module: input_size = 12 (Boston features),
    # output_size = 1, val_loader batch_size = 16.
    INPUT_SIZE = 12
    OUTPUT_SIZE = 1
    BATCH = 16

    key = jax.random.PRNGKey(0)
    kx, kw, kb, kx2 = jax.random.split(key, 4)

    # Deterministic parameter init mirroring nn.Linear's default:
    # uniform(-1/sqrt(in_features), 1/sqrt(in_features)).
    bound = 1.0 / jnp.sqrt(jnp.float32(INPUT_SIZE))
    weight = jax.random.uniform(
        kw, (OUTPUT_SIZE, INPUT_SIZE), jnp.float32, minval=-bound, maxval=bound
    )
    bias = jax.random.uniform(
        kb, (OUTPUT_SIZE,), jnp.float32, minval=-bound, maxval=bound
    )

    # 1) Module-typical batch (16): routed through the small-batch XLA gate.
    x_small = jax.random.normal(kx, (BATCH, INPUT_SIZE), jnp.float32)
    out_small = jax.block_until_ready(linear_forward(x_small, weight, bias))
    ref_small = x_small @ weight.T + bias[None, :]
    assert out_small.shape == (BATCH, OUTPUT_SIZE)
    assert jnp.allclose(out_small, ref_small, atol=1e-5, rtol=1e-5)

    # 2) Exercise the Pallas kernel: 2-step grid with a ragged final tile
    #    (389 % 128 != 0, no wrapper pad), forced past the batch-size gate.
    B_KERNEL = 389
    x_big = jax.random.normal(kx2, (B_KERNEL, INPUT_SIZE), jnp.float32)
    out_big = jax.block_until_ready(
        linear_forward(x_big, weight, bias, min_pallas_batch=0)
    )
    ref_big = x_big @ weight.T + bias[None, :]
    assert out_big.shape == (B_KERNEL, OUTPUT_SIZE)
    assert jnp.allclose(out_big, ref_big, atol=1e-5, rtol=1e-5)

    print("KERNEL_OK")
</pallas_src>

<mosaic_0001>
module attributes {stable_mosaic.version = 11 : i64} {
  func.func @_linear_kernel(%arg0: i32, %arg1: memref<12x256xf32, #tpu.memory_space<vmem>>, %arg2: memref<12x1xf32, #tpu.memory_space<vmem>>, %arg3: memref<1xf32, #tpu.memory_space<smem>>, %arg4: memref<1x256xf32, #tpu.memory_space<vmem>>) attributes {dimension_semantics = [#tpu.dimension_semantics<parallel>], iteration_bounds = array<i64: 2>, scalar_prefetch = 0 : i64, scratch_operands = 0 : i64, tpu.core_type = #tpu.core_type<tc>, window_params = [{transform_indices = @transform_0, window_bounds = array<i64: 12, 256>}, {pipeline_mode = #tpu.pipeline_mode<synchronous>, transform_indices = @transform_1, window_bounds = array<i64: 12, 1>}, {transform_indices = @transform_2, window_bounds = array<i64: 1>}, {transform_indices = @transform_3, window_bounds = array<i64: 1, 256>}]} {
    %c0 = arith.constant 0 : index
    %c0_0 = arith.constant 0 : index
    %0 = vector.load %arg1[%c0, %c0_0] : memref<12x256xf32, #tpu.memory_space<vmem>>, vector<12x256xf32>
    %c0_1 = arith.constant 0 : index
    %c0_2 = arith.constant 0 : index
    %1 = vector.load %arg2[%c0_1, %c0_2] : memref<12x1xf32, #tpu.memory_space<vmem>>, vector<12x1xf32>
    %c0_3 = arith.constant 0 : index
    %2 = memref.load %arg3[%c0_3] : memref<1xf32, #tpu.memory_space<smem>>
    %3 = vector.broadcast %1 : vector<12x1xf32> to vector<12x256xf32>
    %4 = arith.mulf %0, %3 : vector<12x256xf32>
    %cst = arith.constant dense<0.000000e+00> : vector<256xf32>
    %5 = vector.multi_reduction <add>, %4, %cst [0] : vector<12x256xf32> to vector<256xf32>
    %6 = vector.shape_cast %5 : vector<256xf32> to vector<1x256xf32>
    %7 = vector.broadcast %2 : f32 to vector<1x256xf32>
    %8 = arith.addf %6, %7 : vector<1x256xf32>
    %c0_4 = arith.constant 0 : index
    %c0_5 = arith.constant 0 : index
    %9 = vector.load %arg4[%c0_4, %c0_5] : memref<1x256xf32, #tpu.memory_space<vmem>>, vector<1x256xf32>
    tpu.vector_store %arg4[%c0_4, %c0_5], %8 {strides = array<i32>} : memref<1x256xf32, #tpu.memory_space<vmem>>, vector<1x256xf32>,
    return
  }
  func.func @transform_0(%arg0: i32) -> (i32, i32) {
    %c0_i32 = arith.constant 0 : i32
    %c0_i32_0 = arith.constant 0 : i32
    return %c0_i32, %arg0 : i32, i32
  }
  func.func @transform_1(%arg0: i32) -> (i32, i32) {
    %c0_i32 = arith.constant 0 : i32
    %c0_i32_0 = arith.constant 0 : i32
    %c0_i32_1 = arith.constant 0 : i32
    return %c0_i32, %c0_i32_0 : i32, i32
  }
  func.func @transform_2(%arg0: i32) -> i32 {
    %c0_i32 = arith.constant 0 : i32
    %c0_i32_0 = arith.constant 0 : i32
    return %c0_i32 : i32
  }
  func.func @transform_3(%arg0: i32) -> (i32, i32) {
    %c0_i32 = arith.constant 0 : i32
    %c0_i32_0 = arith.constant 0 : i32
    return %c0_i32, %arg0 : i32, i32
  }
}

</mosaic_0001>

<bundles_post_ra>
// kernel: tpu_custom_call.1
= control target key start
LH: loop header
LB: loop body
LE: loop exit
PB: predicated region body
PF: predicated region fallthrough
CT: control target
= control target key end

     0   :  { %s706_s0 = inlined_call_operand.hbm [shape: f32[12,389], index: 0, kind: input, shape index: {}]   ;;  %s707_s1 = inlined_call_operand.vmem [shape: f32[12,1], index: 1, kind: input, shape index: {}]   ;;  %s708_s2 = inlined_call_operand.<no memory space> [shape: f32[1], index: 2, kind: input, shape index: {}]   ;;  %s709_s3 = inlined_call_operand.hbm [shape: f32[1,389], index: 3, kind: output, shape index: {}]  }
   0x1   :  { %8 = sst [smem:[#allocation2]] %s708_s2 }
   0x2   :  { %9 = vsyncpa [#allocation4], 0 }
   0x3   :  { %11 = vsyncpa [#allocation4 + $0x1], 0 }
   0x4   :  { %12 = vsyncpa [#allocation5], 0 }
   0x5   :  { %14 = vsyncpa [#allocation5 + $0x1], 0  ;;  %s537_s14 = smov 0   ;;  %s539_s15 = smov 0  }
   0x6   :  { %s541_s16 = smov 0   ;;  %s543_s17 = smov 0  }
   0x7 LB: > { %s558_s2 = sadd.s32 4294967295, %s505_s17   ;;  %s341_s18 = sadd.s32 4294967294, %s505_s17   ;;  %s505_s17 = sphi %s543_s17, %s723_s17   ;;  %s501_s16 = sphi %s541_s16, %s722_s16   ;;  %s497_s15 = sphi %s539_s15, %s721_s15   ;;  %s493_s14 = sphi %s537_s14, %s720_s14  }
   0x8   : > { %s562_s19 = sadd.s32 1, %s505_s17   ;;  %s27_s20 = sadd.s32 1, %s501_s16 }
   0x9   : > { %s24_s21 = ssub.s32 %s505_s17, %s562_s19  ;;  %p34_p0 = scmp.ne.s32.totalorder %s501_s16, %s497_s15 }
   0xa   : > { %p25_p1 = scmp.eq.s32.totalorder %s24_s21, 0  ;;  %p35_p2 = scmp.eq.s32.totalorder %s505_s17, 0 }
   0xb   : > { %p40_p3 = scmp.ne.s32.totalorder %s497_s15, %s493_s14  ;;  %p41_p4 = scmp.eq.s32.totalorder %s558_s2, 0 }
   0xc   : > { %s574_s22 = scalar_select %p25_p1, %s501_s16, %s27_s20  }
   0xd   : > { %p576_p5 = por %p35_p2, %p34_p0  ;;  %p580_p6 = por %p41_p4, %p40_p3 }
   0xe   : > { %p106_p7 = scmp.eq.s32.totalorder %s558_s2, 1  ;;  %p112_p8 = scmp.eq.s32.totalorder %s341_s18, 1 }
   0xf   : > { %p369_p10 = scmp.lt.s32.totalorder %s505_s17, 2  ;;  %s138_s27 = sand.u32 1, %s501_s16  }
  0x10   : > { %p587_p11 = por %p106_p7, %p34_p0  ;;  %p591_p12 = por %p112_p8, %p40_p3 }
  0x11   : > { %s355_s28 = sshll.u32 %s505_s17, 8  ;;  %s344_s29 = sshll.u32 %s138_s27, 5 }
  0x12   : > { %s713_s25 = scalar_select %p587_p11, 1, 0 }
  0x13   : > { %s714_s26 = scalar_select %p591_p12, 1, 0 }
  0x14   : > { %s600_s5 = scalar_lea.hbm %s706_s0, %s355_s28  ;;  %s142_s6 = scalar_lea.vmem [#allocation3], %s344_s29 }
  0x15   : > { %s149_s7 = sshll.u32 %s142_s6, 4  ;;  %p604_p13 = pnand %p369_p10, %p576_p5  ;;  %s608_s7 = int_to_ptr.vmem [resolvable:$true] %s149_s7 }
  0x16   : > { %s611_s9 = scalar_lea.sflag [#allocation4], %s138_s27  ;;  %s409_s10 = scalar_lea.hbm %s600_s5, 512 }
  0x17   : > { %p410_p1 = scmp.ne.s32.totalorder %s600_s5, %s409_s10  ;;  %p411_p2 = pneg %p604_p13 }
  0x18   : > { %s414_s13 = scalar_lea.hbm %s706_s0, 1024  ;;  %p415_p5 = scmp.lt.u32.totalorder %s600_s5, %s706_s0 }
  0x19   : > { %p412_p3 = pnand %p411_p2, %p410_p1  ;;  %p416_p7 = scmp.lt.u32.totalorder %s414_s13, %s409_s10 }
  0x1a   : > { %p418_p10 = scmp.lt.u32.totalorder %s409_s10, %s600_s5 }
  0x1b   : > { %p413_p4 = pneg %p412_p3  ;;  %p417_p8 = por %p416_p7, %p415_p5 }
  0x1d   : > { %p419_p9 = por %p418_p10, %p417_p8 }
  0x1f   : > { %p420_p0 = pnand %p419_p9, %p413_p4 }
  0x21   : > { %423 = shalt.err (!%p420_p0)
}
  0x22   : > { %s424_s21 = scalar_lea.vmem %s608_s7, 512  ;;  %s507_s23 = smov [#allocation3]  }
  0x23   : > { %p425_p1 = scmp.ne.s32.totalorder %s608_s7, %s424_s21  ;;  %s429_s27 = sshll.u32 %s507_s23, 4  ;;  %s430_s27 = int_to_ptr.vmem [resolvable:$false] %s429_s27 }
  0x24   : > { %s431_s28 = scalar_lea.vmem %s430_s27, 1024  ;;  %p432_p11 = scmp.lt.s32.totalorder %s608_s7, %s430_s27 }
  0x25   : > { %p427_p3 = pnand %p425_p1, %p411_p2  ;;  %p433_p5 = scmp.lt.s32.totalorder %s431_s28, %s424_s21 }
  0x27   : > { %p428_p12 = pneg %p427_p3  ;;  %p434_p7 = por %p433_p5, %p432_p11 }
  0x29   : > { %p435_p8 = pnand %p434_p7, %p428_p12 }
  0x2b   : > { %438 = shalt.err (!%p435_p8)
}
  0x2c   : > { %s508_s29 = smov 512   ;;  %s509_s30 = smov 256  }
  0x2d   : > { %s510_s4 = smov 16   ;;  %p157_p9 = scmp.lt.s32.totalorder %s505_s17, 3 }
  0x2e   : > { %364 = dma.hbm_to_vmem [thread:$0]  (!%p604_p13), %s600_s5, 512, %s608_s7, %s611_s9, %s508_s29, %s509_s30, %s510_s4  }
  0x2f   : > { %p716_p0 = scmp.ge.s32.totalorder %s505_s17, 1 }
  0x31   : > { %p158_p2 = pnand %p716_p0, %p157_p9 }
  0x32   : > { %s643_s6 = sand.u32 (!%p158_p2), 1, %s497_s15  }
  0x33   : > { %161 = sbr.rel (%p158_p2) target bundleno = 231 (0xe7), region = 32  ;;  %s348_s10 = sshll.u32 (!%p158_p2), %s643_s6, 5 }
  0x34   : > { %s164_s11 = scalar_lea.sflag (!%p158_p2), [#allocation4], %s643_s6  ;;  %s167_s12 = scalar_lea.vmem (!%p158_p2), [#allocation3], %s348_s10 }
  0x3a   : > { %484 = dma.done.wait (%p580_p6), %s164_s11, 512  }
  0x3b   : > { %486 = vsyncadd (%p580_p6), %s164_s11, 4294966784  ;;  %v511_v0 = vmov 0   ;;  %v197_v1 = vld [vmem:[%s707_s1 + $0x8] sm:$0xf]  ;;  %v196_v2 = vld [vmem:[%s707_s1] sm:$0xff]  ;;  %vm213_vm0 = vcmask 1043456   ;;  %v239_v25 = vlaneseq }
  0x3c   : > { %408 = vset.pattern.permute.xlu0 %v511_v0  ;;  %v194_v3 = vld [vmem:[%s167_s12 + $0x10] sm:$0xf]  ;;  %v195_v4 = vld [vmem:[%s167_s12 + $0x18] sm:$0xf]  ;;  %v192_v8 = vld [vmem:[%s167_s12] sm:$0xff]  ;;  %s198_s24 = sld [smem:[#allocation2]] }
  0x3d   : > { %206 = vperm.xlu0 %408, %v197_v1   ;;  %v193_v9 = vld [vmem:[%s167_s12 + $0x8] sm:$0xff]  ;;  %v512_v23 = vmov 1966171168   ;;  %v240_v31 = vshrl.u32 %v239_v25, 7  ;;  %s349_s13 = sshll.u32 %s643_s6, 1  ;;  %s356_s18 = sshll.u32 %s558_s2, 5 }
  0x3e   : > { %v237_v24 = vunpack.c.l.s4 %v512_v23  ;;  %s189_s20 = scalar_lea.vmem [#allocation6], %s349_s13  ;;  %vm253_vm1 = vcmp.lt.s32.totalorder %v239_v25, 256  ;;  %s662_s28 = scalar_lea.hbm %s709_s3, %s356_s18 }
  0x3f   : > { %s271_s21 = sshll.u32 %s189_s20, 4  ;;  %s257_s29 = scalar_lea.sflag [#allocation5], %s643_s6  ;;  %s664_s21 = int_to_ptr.vmem [resolvable:$true] %s271_s21 }
  0x40   : > { %v238_v30 = vunpack.c.0.s8 %v237_v24  ;;  %s439_s30 = scalar_lea.vmem %s664_s21, 32  ;;  %p717_p11 = scmp.ne.s32.totalorder %s713_s25, 0 }
  0x41   : > { %201 = vperm.xlu0 %408, %v196_v2   ;;  %p440_p6 = scmp.ne.s32.totalorder %s664_s21, %s439_s30  ;;  %s513_s2 = smov [#allocation6]  }
  0x42   : > { %v230_v32 = vstv %s198_s24  ;;  %v241_v37 = vsub.s32 %v238_v30, %v240_v31  ;;  %s443_s4 = sshll.u32 %s513_s2, 4  ;;  %s444_s4 = int_to_ptr.vmem [resolvable:$false] %s443_s4 }
  0x43   : > { %p441_p12 = pnand %p440_p6, %p717_p11  ;;  %s445_s10 = scalar_lea.vmem %s444_s4, 64 }
  0x44   : > { %p446_p4 = scmp.lt.s32.totalorder %s664_s21, %s444_s4  ;;  %p447_p10 = scmp.lt.s32.totalorder %s445_s10, %s439_s30 }
  0x45   : > { %p442_p13 = pneg %p441_p12 }
  0x46   : > { %p448_p1 = por %p447_p10, %p446_p4 }
  0x48   : > { %p449_p3 = pnand %p448_p1, %p442_p13 }
  0xbc   : > { %v207_v5 = vpop.permute.xlu0 %206 }
  0xbd   : > { %v211_v6 = vmul.f32 %v207_v5, %v194_v3  ;;  %v212_v7 = vmul.f32 %v207_v5, %v195_v4 }
  0xbf   : > { %v214_v13 = vsel %vm213_vm0, %v211_v6, 0.0  ;;  %v222_v14 = vsel %vm213_vm0, %v212_v7, 0.0 }
  0xc0   : > { %v202_v10 = vpop.permute.xlu0 %201 }
  0xc1   : > { %v209_v11 = vmul.f32 %v202_v10, %v192_v8  ;;  %v210_v12 = vmul.f32 %v202_v10, %v193_v9 }
  0xc3   : > { %v215_v15 = vadd.f32 %v214_v13, %v209_v11  ;;  %v223_v16 = vadd.f32 %v222_v14, %v210_v12 }
  0xc5   : > { %v216_v17 = vrot.slane %v215_v15, 4  ;;  %v224_v18 = vrot.slane %v223_v16, 4 }
  0xc7   : > { %v217_v19 = vadd.f32 %v216_v17, %v215_v15  ;;  %v225_v20 = vadd.f32 %v224_v18, %v223_v16 }
  0xc9   : > { %v218_v21 = vrot.slane %v217_v19, 2  ;;  %v226_v22 = vrot.slane %v225_v20, 2 }
  0xcb   : > { %v219_v26 = vadd.f32 %v218_v21, %v217_v19  ;;  %v227_v27 = vadd.f32 %v226_v22, %v225_v20 }
  0xcd   : > { %v220_v28 = vrot.slane %v219_v26, 1  ;;  %v228_v29 = vrot.slane %v227_v27, 1 }
  0xcf   : > { %v221_v33 = vadd.f32 %v220_v28, %v219_v26  ;;  %v229_v34 = vadd.f32 %v228_v29, %v227_v27 }
  0xd1   : > { %v231_v35 = vadd.f32 %v230_v32, %v221_v33  ;;  %v232_v36 = vadd.f32 %v230_v32, %v229_v34 }
  0xd3   : > { %v235_v38 = vcombine.low %v231_v35, %v232_v36 }
  0xd5   : > { %v242_v39 = vrot.slane %v235_v38, %v241_v37 }
  0xd7   : > { %v249_v40 = vrot.slane %v242_v39, %v241_v37 }
  0xd9   : > { %255 = vst.msk [vmem:[%s189_s20] sm:$0x3] %vm253_vm1, %v249_v40 }
  0xda   : > { %452 = shalt.err (!%p449_p3)
}
  0xdb   : > { %s453_s6 = scalar_lea.hbm %s662_s28, 32  ;;  %s457_s5 = scalar_lea.hbm %s709_s3, 64 }
  0xdc   : > { %p454_p5 = scmp.ne.s32.totalorder %s662_s28, %s453_s6  ;;  %p458_p9 = scmp.lt.u32.totalorder %s662_s28, %s709_s3 }
  0xdd   : > { %p459_p0 = scmp.lt.u32.totalorder %s457_s5, %s453_s6  ;;  %p461_p6 = scmp.lt.u32.totalorder %s453_s6, %s662_s28 }
  0xde   : > { %p455_p7 = pnand %p454_p5, %p717_p11 }
  0xdf   : > { %p460_p2 = por %p459_p0, %p458_p9 }
  0xe0   : > { %p456_p8 = pneg %p455_p7 }
  0xe1   : > { %p462_p12 = por %p461_p6, %p460_p2 }
  0xe3   : > { %p463_p13 = pnand %p462_p12, %p456_p8 }
  0xe5   : > { %466 = shalt.err (!%p463_p13)
}
  0xe6   : > { %359 = dma.vmem_to_hbm [thread:$0]  (%p717_p11), %s664_s21, 32, %s662_s28, %s257_s29  }
  0xe7 PF: > { %s283_s9 = sand.u32 1, %s493_s14   ;;  %p718_p4 = scmp.ne.s32.totalorder %s714_s26, 0 }
  0xe8   : > { %p719_p10 = scmp.ge.s32.totalorder %s505_s17, 2  ;;  %s284_s24 = scalar_lea.sflag [#allocation5], %s283_s9 }
  0xea   : > { %p366_p1 = pnand %p719_p10, %p718_p4 }
  0xec   : > { %488 = dma.done.wait (!%p366_p1), %s284_s24, 32  }
  0xed   : > { %490 = vsyncadd (!%p366_p1), %s284_s24, 4294967264  ;;  %p17_p3 = scmp.ge.s32.totalorder %s562_s19, 4   ;;  %s720_s14 = smov %s497_s15 }
  0xee   : > { %s721_s15 = smov %s501_s16  ;;  %s722_s16 = smov %s574_s22 }
  0xef   : > { %s723_s17 = smov %s562_s19  ;;  %19 = sbr.rel (!%p17_p3) target bundleno = 7 (0x7), region = 77 }
  0xf6   :  { %289 = vsyncpa [#allocation4], 1 }
  0xf7   :  { %291 = vsyncpa [#allocation4 + $0x1], 1 }
  0xf8   :  { %292 = vsyncpa [#allocation5], 1 }
  0xf9   :  { %294 = vsyncpa [#allocation5 + $0x1], 1 }

</bundles_post_ra>
